<compile_context>
chip_gen: v7x
topology: tpu7x:2x2x1
jax: 0.10.0
libtpu: 0.0.40
codegen_flags: <defaults>
</compile_context>

<pallas_src>
import functools

import jax
import jax.numpy as jnp
from jax.experimental import pallas as pl
from jax.experimental.pallas import tpu as pltpu

K_TAPS = 3  # TCN causal conv kernel size


def _vmem_spec():
    return pl.BlockSpec(memory_space=pltpu.MemorySpace.VMEM)


# ------------------------------ fused forward kernel ------------------------
def fused_kernel(
    # inputs
    x_win_ref, x_tgt_ref,
    w1_ref, b1_ref, w2_ref, b2_ref,
    a_gnn_ref, gw_ref, gb_ref, a_ctx_ref,
    dw1_ref, db1_ref, dw2_ref, db2_ref,
    # outputs
    slab_ref, loss_ref,
    *, num_layer, num_hop):
    N = x_tgt_ref.shape[0]
    M = x_win_ref.shape[0]        # = 2N (semantic + temporal node sets stacked)
    H = w2_ref.shape[1]
    H2 = 2 * H

    # ---- shared TCN encoder, last-step receptive field only (2 matmuls) ----
    # conv1: banded weight produces the last K conv1 steps lane-concatenated.
    h1 = jnp.maximum(
        jnp.dot(x_win_ref[...], w1_ref[...], preferred_element_type=jnp.float32)
        + b1_ref[...], 0.0)                                   # (2N, K*H)
    # conv2: single matmul over the K taps -> node embedding (last time step).
    emb = jnp.maximum(
        jnp.dot(h1, w2_ref[...], preferred_element_type=jnp.float32)
        + b2_ref[...], 0.0)                                   # (2N, H)

    # ---- batched GNN stacks (block-diagonal adjacency / weights) ------------
    # carry (2N, 2H): top rows valid in cols [0:H] (semantic), bottom rows valid
    # in cols [H:2H] (temporal); off-diagonal blocks hold junk but never leak.
    h_blk = jnp.concatenate([emb, emb], axis=-1)              # (2N, 2H)
    for l in range(num_layer):
        agg = jnp.dot(a_gnn_ref[...], h_blk, preferred_element_type=jnp.float32)
        h_blk = jnp.maximum(
            jnp.dot(agg, gw_ref[l], preferred_element_type=jnp.float32)
            + gb_ref[l], 0.0)
    out = jnp.concatenate([h_blk[0:N, 0:H], h_blk[N:M, H:H2]], axis=-1)  # (N,2H)

    # ---- batched multi-hop mean contexts; forward returns (out - context) ---
    if num_hop > 0:
        h = jnp.concatenate([out, out], axis=0)               # (2N, 2H)
        acc = jnp.zeros_like(h)
        for _ in range(num_hop):
            h = jnp.dot(a_ctx_ref[...], h, preferred_element_type=jnp.float32)
            acc = acc + h
        ctx = acc * (1.0 / num_hop)
        res1 = out - ctx[0:N]
        res2 = out - ctx[N:M]
    else:                                                     # guard /0
        res1 = out
        res2 = out

    # ---- decoder (2-layer MLP) + MSE loss ------------------------------------
    dh = jnp.maximum(
        jnp.dot(out, dw1_ref[...], preferred_element_type=jnp.float32)
        + db1_ref[...], 0.0)
    x_hat = (jnp.dot(dh, dw2_ref[...], preferred_element_type=jnp.float32)
             + db2_ref[...])                                  # (N, L*D)
    diff = x_tgt_ref[...] - x_hat
    sq = diff * diff
    row_sum = jnp.sum(sq, axis=1, keepdims=True)              # (N, 1)
    loss_ref[...] = jnp.sum(row_sum, axis=0, keepdims=True) * (
        1.0 / float(sq.shape[0] * sq.shape[1]))

    # ---- packed output slab: [res1 | res2 | out] -----------------------------
    # first store is one full 128-lane tile (4H = 128 at H=32); second store is
    # tile-aligned at lane 2*H2.
    slab_ref[:, 0:2 * H2] = jnp.concatenate([res1, res2], axis=-1)
    slab_ref[:, 2 * H2:3 * H2] = out


# -------------------------------- full forward ------------------------------
def _block_diag(a, b):
    za = jnp.zeros((a.shape[0], b.shape[1]), jnp.float32)
    zb = jnp.zeros((b.shape[0], a.shape[1]), jnp.float32)
    return jnp.concatenate(
        [jnp.concatenate([a, za], axis=1),
         jnp.concatenate([zb, b], axis=1)], axis=0)


def mcad_forward(params, x_sem, x_tem, a_sem_gnn, a_tem_gnn,
                 a_sem_ctx, a_tem_ctx, num_hop):
    N, L, D = x_sem.shape
    K = params['proj']['w1'].shape[0]
    H = params['proj']['w1'].shape[-1]
    num_layer = params['gnn_sem']['w'].shape[0]
    R = 2 * K - 1                       # receptive field of the last output step

    # last-step receptive-field window of x, flattened + stacked (trace-time glue)
    if L >= R:
        xs = x_sem[:, L - R:, :]
        xt = x_tem[:, L - R:, :]
    else:
        pad = R - L
        xs = jnp.pad(x_sem, ((0, 0), (pad, 0), (0, 0)))
        xt = jnp.pad(x_tem, ((0, 0), (pad, 0), (0, 0)))
    x_win = jnp.concatenate([xs.reshape(N, R * D), xt.reshape(N, R * D)], axis=0)

    # MSE target (contiguous reshape, trace-time glue).
    x_tgt = x_sem.reshape(N, L * D)

    # banded conv1 weight: column block j (output step L-K+j) gets taps stacked
    # at row offset j*D, so one matmul computes the last K conv1 steps.
    w1 = params['proj']['w1']                       # (K, D, H)
    w1_flat = w1.reshape(K * D, H)
    w1_big = jnp.zeros((R * D, K * H), jnp.float32)
    for j in range(K):
        w1_big = w1_big.at[j * D:(j + K) * D, j * H:(j + 1) * H].set(w1_flat)
    b1_big = jnp.tile(params['proj']['b1'], (1, K))           # (1, K*H)
    w2_flat = params['proj']['w2'].reshape(K * H, H)          # (K*H, H)

    # block-diagonal batched GNN / context operands (tiny, trace-time).
    a_gnn_blk = _block_diag(a_sem_gnn, a_tem_gnn)             # (2N, 2N)
    a_ctx_blk = _block_diag(a_sem_ctx, a_tem_ctx)             # (2N, 2N)
    gw_blk = jax.vmap(_block_diag)(params['gnn_sem']['w'],
                                   params['gnn_tem']['w'])    # (num_layer,2H,2H)
    gb_cat = jnp.concatenate([params['gnn_sem']['b'],
                              params['gnn_tem']['b']], axis=-1)  # (num_layer,1,2H)

    kernel = functools.partial(fused_kernel, num_layer=num_layer,
                               num_hop=num_hop)
    slab, loss = pl.pallas_call(
        kernel,
        out_shape=(jax.ShapeDtypeStruct((N, 6 * H), jnp.float32),
                   jax.ShapeDtypeStruct((1, 1), jnp.float32)),
        in_specs=[_vmem_spec()] * 14,
        out_specs=(_vmem_spec(), _vmem_spec()),
    )(x_win, x_tgt,
      w1_big, b1_big, w2_flat, params['proj']['b2'],
      a_gnn_blk, gw_blk, gb_cat, a_ctx_blk,
      params['dec']['w1'], params['dec']['b1'],
      params['dec']['w2'], params['dec']['b2'])

    res1 = slab[:, 0:2 * H]
    res2 = slab[:, 2 * H:4 * H]
    out = slab[:, 4 * H:6 * H]
    return res1, res2, loss[0, 0], out


# ----------------------------------- setup -----------------------------------
def init_params(key, L, D, H, num_layer):
    ks = jax.random.split(key, 6)
    s = 0.1
    return {
        'proj': {
            'w1': s * jax.random.normal(ks[0], (K_TAPS, D, H), jnp.float32),
            'b1': jnp.zeros((1, H), jnp.float32),
            'w2': s * jax.random.normal(ks[1], (K_TAPS, H, H), jnp.float32),
            'b2': jnp.zeros((1, H), jnp.float32),
        },
        'gnn_sem': {
            'w': s * jax.random.normal(ks[2], (num_layer, H, H), jnp.float32),
            'b': jnp.zeros((num_layer, 1, H), jnp.float32),
        },
        'gnn_tem': {
            'w': s * jax.random.normal(ks[3], (num_layer, H, H), jnp.float32),
            'b': jnp.zeros((num_layer, 1, H), jnp.float32),
        },
        'dec': {
            'w1': s * jax.random.normal(ks[4], (2 * H, H), jnp.float32),
            'b1': jnp.zeros((1, H), jnp.float32),
            'w2': s * jax.random.normal(ks[5], (H, L * D), jnp.float32),
            'b2': jnp.zeros((1, L * D), jnp.float32),
        },
    }


def dense_norm_adj(edge_index, n, add_self_loops):
    src, dst = edge_index[0], edge_index[1]
    a = jnp.zeros((n, n), jnp.float32).at[dst, src].add(1.0)
    if add_self_loops:
        a = a + jnp.eye(n, dtype=jnp.float32)
    deg = jnp.maximum(jnp.sum(a, axis=-1, keepdims=True), 1.0)
    return a / deg


if __name__ == "__main__":
    N, L, D, H = 8, 8, 4, 32            # nodes, subseq_len, input_dim, hidden_dim
    NUM_LAYER, NUM_HOP = 2, 2

    key = jax.random.PRNGKey(0)
    kx, kp = jax.random.split(key)
    x = jax.random.normal(kx, (N, L, D), jnp.float32)  # shared node time series

    # semantic graph: ring (both directions)
    i = jnp.arange(N)
    ei_sem = jnp.stack([jnp.concatenate([i, (i + 1) % N]),
                        jnp.concatenate([(i + 1) % N, i])])          # (2, 16)
    edge_attr_sem = jnp.ones((ei_sem.shape[1],), jnp.float32)        # unused (see TODO)
    # temporal graph: chain (both directions)
    j = jnp.arange(N - 1)
    ei_tem = jnp.stack([jnp.concatenate([j, j + 1]),
                        jnp.concatenate([j + 1, j])])                # (2, 14)

    a_sem_gnn = dense_norm_adj(ei_sem, N, True)
    a_tem_gnn = dense_norm_adj(ei_tem, N, True)
    a_sem_ctx = dense_norm_adj(ei_sem, N, False)
    a_tem_ctx = dense_norm_adj(ei_tem, N, False)

    params = init_params(kp, L, D, H, NUM_LAYER)

    fwd = jax.jit(functools.partial(mcad_forward, num_hop=NUM_HOP))
    res1, res2, loss, out = fwd(params, x, x, a_sem_gnn, a_tem_gnn,
                                a_sem_ctx, a_tem_ctx)
    jax.block_until_ready((res1, res2, loss, out))

    assert res1.shape == (N, 2 * H)
    assert res2.shape == (N, 2 * H)
    assert out.shape == (N, 2 * H)
    assert loss.shape == ()
    assert bool(jnp.isfinite(loss))
    assert bool(jnp.all(jnp.isfinite(res1))) and bool(jnp.all(jnp.isfinite(res2)))
    print("KERNEL_OK")
</pallas_src>

<mosaic_0001>
module attributes {stable_mosaic.version = 11 : i64} {
  func.func @fused_kernel(%arg0: memref<16x20xf32, #tpu.memory_space<vmem>>, %arg1: memref<8x32xf32, #tpu.memory_space<vmem>>, %arg2: memref<20x96xf32, #tpu.memory_space<vmem>>, %arg3: memref<1x96xf32, #tpu.memory_space<vmem>>, %arg4: memref<96x32xf32, #tpu.memory_space<vmem>>, %arg5: memref<1x32xf32, #tpu.memory_space<vmem>>, %arg6: memref<16x16xf32, #tpu.memory_space<vmem>>, %arg7: memref<2x64x64xf32, #tpu.memory_space<vmem>>, %arg8: memref<2x1x64xf32, #tpu.memory_space<vmem>>, %arg9: memref<16x16xf32, #tpu.memory_space<vmem>>, %arg10: memref<64x32xf32, #tpu.memory_space<vmem>>, %arg11: memref<1x32xf32, #tpu.memory_space<vmem>>, %arg12: memref<32x32xf32, #tpu.memory_space<vmem>>, %arg13: memref<1x32xf32, #tpu.memory_space<vmem>>, %arg14: memref<8x192xf32, #tpu.memory_space<vmem>>, %arg15: memref<1x1xf32, #tpu.memory_space<vmem>>) attributes {dimension_semantics = [], scalar_prefetch = 0 : i64, scratch_operands = 0 : i64, tpu.core_type = #tpu.core_type<tc>} {
    %c0 = arith.constant 0 : index
    %c0_0 = arith.constant 0 : index
    %0 = vector.load %arg0[%c0, %c0_0] : memref<16x20xf32, #tpu.memory_space<vmem>>, vector<16x20xf32>
    %c0_1 = arith.constant 0 : index
    %c0_2 = arith.constant 0 : index
    %1 = vector.load %arg2[%c0_1, %c0_2] : memref<20x96xf32, #tpu.memory_space<vmem>>, vector<20x96xf32>
    %cst = arith.constant dense<0.000000e+00> : vector<16x96xf32>
    %2 = tpu.matmul %0, %1, %cst {dimension_numbers = #tpu.dot_dimension_numbers<[1], [0], [0], [1], [0, 0, 1, 1], [], []>} : vector<16x20xf32>, vector<20x96xf32>, vector<16x96xf32> -> vector<16x96xf32>
    %c0_3 = arith.constant 0 : index
    %c0_4 = arith.constant 0 : index
    %3 = vector.load %arg3[%c0_3, %c0_4] : memref<1x96xf32, #tpu.memory_space<vmem>>, vector<1x96xf32>
    %4 = vector.broadcast %3 : vector<1x96xf32> to vector<16x96xf32>
    %5 = arith.addf %2, %4 : vector<16x96xf32>
    %cst_5 = arith.constant 0.000000e+00 : f32
    %6 = vector.broadcast %cst_5 : f32 to vector<16x96xf32>
    %7 = arith.maximumf %5, %6 : vector<16x96xf32>
    %c0_6 = arith.constant 0 : index
    %c0_7 = arith.constant 0 : index
    %8 = vector.load %arg4[%c0_6, %c0_7] : memref<96x32xf32, #tpu.memory_space<vmem>>, vector<96x32xf32>
    %cst_8 = arith.constant dense<0.000000e+00> : vector<16x32xf32>
    %9 = tpu.matmul %7, %8, %cst_8 {dimension_numbers = #tpu.dot_dimension_numbers<[1], [0], [0], [1], [0, 0, 1, 1], [], []>} : vector<16x96xf32>, vector<96x32xf32>, vector<16x32xf32> -> vector<16x32xf32>
    %c0_9 = arith.constant 0 : index
    %c0_10 = arith.constant 0 : index
    %10 = vector.load %arg5[%c0_9, %c0_10] : memref<1x32xf32, #tpu.memory_space<vmem>>, vector<1x32xf32>
    %11 = vector.broadcast %10 : vector<1x32xf32> to vector<16x32xf32>
    %12 = arith.addf %9, %11 : vector<16x32xf32>
    %cst_11 = arith.constant 0.000000e+00 : f32
    %13 = vector.broadcast %cst_11 : f32 to vector<16x32xf32>
    %14 = arith.maximumf %12, %13 : vector<16x32xf32>
    %15 = tpu.concatenate %14, %14 in 1 : vector<16x32xf32>, vector<16x32xf32> -> vector<16x64xf32>
    %c0_12 = arith.constant 0 : index
    %c0_13 = arith.constant 0 : index
    %16 = vector.load %arg6[%c0_12, %c0_13] : memref<16x16xf32, #tpu.memory_space<vmem>>, vector<16x16xf32>
    %cst_14 = arith.constant dense<0.000000e+00> : vector<16x64xf32>
    %17 = tpu.matmul %16, %15, %cst_14 {dimension_numbers = #tpu.dot_dimension_numbers<[1], [0], [0], [1], [0, 0, 1, 1], [], []>} : vector<16x16xf32>, vector<16x64xf32>, vector<16x64xf32> -> vector<16x64xf32>
    %c0_15 = arith.constant 0 : index
    %c0_16 = arith.constant 0 : index
    %c0_17 = arith.constant 0 : index
    %18 = vector.load %arg7[%c0_15, %c0_16, %c0_17] : memref<2x64x64xf32, #tpu.memory_space<vmem>>, vector<1x64x64xf32>
    %19 = vector.shape_cast %18 : vector<1x64x64xf32> to vector<64x64xf32>
    %cst_18 = arith.constant dense<0.000000e+00> : vector<16x64xf32>
    %20 = tpu.matmul %17, %19, %cst_18 {dimension_numbers = #tpu.dot_dimension_numbers<[1], [0], [0], [1], [0, 0, 1, 1], [], []>} : vector<16x64xf32>, vector<64x64xf32>, vector<16x64xf32> -> vector<16x64xf32>
    %c0_19 = arith.constant 0 : index
    %c0_20 = arith.constant 0 : index
    %c0_21 = arith.constant 0 : index
    %21 = vector.load %arg8[%c0_19, %c0_20, %c0_21] : memref<2x1x64xf32, #tpu.memory_space<vmem>>, vector<1x1x64xf32>
    %22 = vector.shape_cast %21 : vector<1x1x64xf32> to vector<1x64xf32>
    %23 = vector.broadcast %22 : vector<1x64xf32> to vector<16x64xf32>
    %24 = arith.addf %20, %23 : vector<16x64xf32>
    %cst_22 = arith.constant 0.000000e+00 : f32
    %25 = vector.broadcast %cst_22 : f32 to vector<16x64xf32>
    %26 = arith.maximumf %24, %25 : vector<16x64xf32>
    %c0_23 = arith.constant 0 : index
    %c0_24 = arith.constant 0 : index
    %27 = vector.load %arg6[%c0_23, %c0_24] : memref<16x16xf32, #tpu.memory_space<vmem>>, vector<16x16xf32>
    %cst_25 = arith.constant dense<0.000000e+00> : vector<16x64xf32>
    %28 = tpu.matmul %27, %26, %cst_25 {dimension_numbers = #tpu.dot_dimension_numbers<[1], [0], [0], [1], [0, 0, 1, 1], [], []>} : vector<16x16xf32>, vector<16x64xf32>, vector<16x64xf32> -> vector<16x64xf32>
    %c1 = arith.constant 1 : index
    %c0_26 = arith.constant 0 : index
    %c0_27 = arith.constant 0 : index
    %29 = vector.load %arg7[%c1, %c0_26, %c0_27] : memref<2x64x64xf32, #tpu.memory_space<vmem>>, vector<1x64x64xf32>
    %30 = vector.shape_cast %29 : vector<1x64x64xf32> to vector<64x64xf32>
    %cst_28 = arith.constant dense<0.000000e+00> : vector<16x64xf32>
    %31 = tpu.matmul %28, %30, %cst_28 {dimension_numbers = #tpu.dot_dimension_numbers<[1], [0], [0], [1], [0, 0, 1, 1], [], []>} : vector<16x64xf32>, vector<64x64xf32>, vector<16x64xf32> -> vector<16x64xf32>
    %c1_29 = arith.constant 1 : index
    %c0_30 = arith.constant 0 : index
    %c0_31 = arith.constant 0 : index
    %32 = vector.load %arg8[%c1_29, %c0_30, %c0_31] : memref<2x1x64xf32, #tpu.memory_space<vmem>>, vector<1x1x64xf32>
    %33 = vector.shape_cast %32 : vector<1x1x64xf32> to vector<1x64xf32>
    %34 = vector.broadcast %33 : vector<1x64xf32> to vector<16x64xf32>
    %35 = arith.addf %31, %34 : vector<16x64xf32>
    %cst_32 = arith.constant 0.000000e+00 : f32
    %36 = vector.broadcast %cst_32 : f32 to vector<16x64xf32>
    %37 = arith.maximumf %35, %36 : vector<16x64xf32>
    %38 = vector.extract_strided_slice %37 {offsets = [0, 0], sizes = [8, 32], strides = [1, 1]} : vector<16x64xf32> to vector<8x32xf32>
    %39 = vector.extract_strided_slice %37 {offsets = [8, 32], sizes = [8, 32], strides = [1, 1]} : vector<16x64xf32> to vector<8x32xf32>
    %40 = tpu.concatenate %38, %39 in 1 : vector<8x32xf32>, vector<8x32xf32> -> vector<8x64xf32>
    %41 = tpu.concatenate %40, %40 in 0 : vector<8x64xf32>, vector<8x64xf32> -> vector<16x64xf32>
    %cst_33 = arith.constant 0.000000e+00 : f32
    %42 = vector.broadcast %cst_33 : f32 to vector<16x64xf32>
    %c0_34 = arith.constant 0 : index
    %c0_35 = arith.constant 0 : index
    %43 = vector.load %arg9[%c0_34, %c0_35] : memref<16x16xf32, #tpu.memory_space<vmem>>, vector<16x16xf32>
    %cst_36 = arith.constant dense<0.000000e+00> : vector<16x64xf32>
    %44 = tpu.matmul %43, %41, %cst_36 {dimension_numbers = #tpu.dot_dimension_numbers<[1], [0], [0], [1], [0, 0, 1, 1], [], []>} : vector<16x16xf32>, vector<16x64xf32>, vector<16x64xf32> -> vector<16x64xf32>
    %45 = arith.addf %42, %44 : vector<16x64xf32>
    %c0_37 = arith.constant 0 : index
    %c0_38 = arith.constant 0 : index
    %46 = vector.load %arg9[%c0_37, %c0_38] : memref<16x16xf32, #tpu.memory_space<vmem>>, vector<16x16xf32>
    %cst_39 = arith.constant dense<0.000000e+00> : vector<16x64xf32>
    %47 = tpu.matmul %46, %44, %cst_39 {dimension_numbers = #tpu.dot_dimension_numbers<[1], [0], [0], [1], [0, 0, 1, 1], [], []>} : vector<16x16xf32>, vector<16x64xf32>, vector<16x64xf32> -> vector<16x64xf32>
    %48 = arith.addf %45, %47 : vector<16x64xf32>
    %cst_40 = arith.constant 5.000000e-01 : f32
    %49 = vector.broadcast %cst_40 : f32 to vector<16x64xf32>
    %50 = arith.mulf %48, %49 : vector<16x64xf32>
    %51 = vector.extract_strided_slice %50 {offsets = [0, 0], sizes = [8, 64], strides = [1, 1]} : vector<16x64xf32> to vector<8x64xf32>
    %52 = arith.subf %40, %51 : vector<8x64xf32>
    %53 = vector.extract_strided_slice %50 {offsets = [8, 0], sizes = [8, 64], strides = [1, 1]} : vector<16x64xf32> to vector<8x64xf32>
    %54 = arith.subf %40, %53 : vector<8x64xf32>
    %c0_41 = arith.constant 0 : index
    %c0_42 = arith.constant 0 : index
    %55 = vector.load %arg10[%c0_41, %c0_42] : memref<64x32xf32, #tpu.memory_space<vmem>>, vector<64x32xf32>
    %cst_43 = arith.constant dense<0.000000e+00> : vector<8x32xf32>
    %56 = tpu.matmul %40, %55, %cst_43 {dimension_numbers = #tpu.dot_dimension_numbers<[1], [0], [0], [1], [0, 0, 1, 1], [], []>} : vector<8x64xf32>, vector<64x32xf32>, vector<8x32xf32> -> vector<8x32xf32>
    %c0_44 = arith.constant 0 : index
    %c0_45 = arith.constant 0 : index
    %57 = vector.load %arg11[%c0_44, %c0_45] : memref<1x32xf32, #tpu.memory_space<vmem>>, vector<1x32xf32>
    %58 = vector.broadcast %57 : vector<1x32xf32> to vector<8x32xf32>
    %59 = arith.addf %56, %58 : vector<8x32xf32>
    %cst_46 = arith.constant 0.000000e+00 : f32
    %60 = vector.broadcast %cst_46 : f32 to vector<8x32xf32>
    %61 = arith.maximumf %59, %60 : vector<8x32xf32>
    %c0_47 = arith.constant 0 : index
    %c0_48 = arith.constant 0 : index
    %62 = vector.load %arg12[%c0_47, %c0_48] : memref<32x32xf32, #tpu.memory_space<vmem>>, vector<32x32xf32>
    %cst_49 = arith.constant dense<0.000000e+00> : vector<8x32xf32>
    %63 = tpu.matmul %61, %62, %cst_49 {dimension_numbers = #tpu.dot_dimension_numbers<[1], [0], [0], [1], [0, 0, 1, 1], [], []>} : vector<8x32xf32>, vector<32x32xf32>, vector<8x32xf32> -> vector<8x32xf32>
    %c0_50 = arith.constant 0 : index
    %c0_51 = arith.constant 0 : index
    %64 = vector.load %arg13[%c0_50, %c0_51] : memref<1x32xf32, #tpu.memory_space<vmem>>, vector<1x32xf32>
    %65 = vector.broadcast %64 : vector<1x32xf32> to vector<8x32xf32>
    %66 = arith.addf %63, %65 : vector<8x32xf32>
    %c0_52 = arith.constant 0 : index
    %c0_53 = arith.constant 0 : index
    %67 = vector.load %arg1[%c0_52, %c0_53] : memref<8x32xf32, #tpu.memory_space<vmem>>, vector<8x32xf32>
    %68 = arith.subf %67, %66 : vector<8x32xf32>
    %69 = arith.mulf %68, %68 : vector<8x32xf32>
    %cst_54 = arith.constant dense<0.000000e+00> : vector<8xf32>
    %70 = vector.multi_reduction <add>, %69, %cst_54 [1] : vector<8x32xf32> to vector<8xf32>
    %71 = vector.shape_cast %70 : vector<8xf32> to vector<8x1xf32>
    %cst_55 = arith.constant dense<0.000000e+00> : vector<1xf32>
    %72 = vector.multi_reduction <add>, %71, %cst_55 [0] : vector<8x1xf32> to vector<1xf32>
    %73 = vector.shape_cast %72 : vector<1xf32> to vector<1x1xf32>
    %cst_56 = arith.constant 3.906250e-03 : f32
    %74 = vector.broadcast %cst_56 : f32 to vector<1x1xf32>
    %75 = arith.mulf %73, %74 : vector<1x1xf32>
    %c0_57 = arith.constant 0 : index
    %c0_58 = arith.constant 0 : index
    %76 = vector.load %arg15[%c0_57, %c0_58] : memref<1x1xf32, #tpu.memory_space<vmem>>, vector<1x1xf32>
    tpu.vector_store %arg15[%c0_57, %c0_58], %75 {strides = array<i32>} : memref<1x1xf32, #tpu.memory_space<vmem>>, vector<1x1xf32>,
    %77 = tpu.concatenate %52, %54 in 1 : vector<8x64xf32>, vector<8x64xf32> -> vector<8x128xf32>
    %c0_59 = arith.constant 0 : index
    %c0_60 = arith.constant 0 : index
    %78 = vector.load %arg14[%c0_59, %c0_60] : memref<8x192xf32, #tpu.memory_space<vmem>>, vector<8x128xf32>
    tpu.vector_store %arg14[%c0_59, %c0_60], %77 {strides = array<i32>} : memref<8x192xf32, #tpu.memory_space<vmem>>, vector<8x128xf32>,
    %c0_61 = arith.constant 0 : index
    %c128 = arith.constant 128 : index
    %79 = vector.load %arg14[%c0_61, %c128] : memref<8x192xf32, #tpu.memory_space<vmem>>, vector<8x64xf32>
    tpu.vector_store %arg14[%c0_61, %c128], %40 {strides = array<i32>} : memref<8x192xf32, #tpu.memory_space<vmem>>, vector<8x64xf32>,
    return
  }
}

</mosaic_0001>

<bundles_post_ra>
// kernel: mcad_forward.1
= control target key start
LH: loop header
LB: loop body
LE: loop exit
PB: predicated region body
PF: predicated region fallthrough
CT: control target
= control target key end

     0   :  { %vm62_vm0 = vcmask 162816   ;;  %vm69_vm1 = vcmask 1043456   ;;  %s1672_s0 = inlined_call_operand.vmem [shape: f32[16,20], index: 0, kind: input, shape index: {}]   ;;  %s1673_s1 = inlined_call_operand.vmem [shape: f32[8,32], index: 1, kind: input, shape index: {}]   ;;  %s1674_s2 = inlined_call_operand.vmem [shape: f32[20,96], index: 2, kind: input, shape index: {}]   ;;  %s1675_s3 = inlined_call_operand.vmem [shape: f32[1,96], index: 3, kind: input, shape index: {}]   ;;  %s1676_s4 = inlined_call_operand.vmem [shape: f32[96,32], index: 4, kind: input, shape index: {}]   ;;  %s1677_s5 = inlined_call_operand.vmem [shape: f32[1,32], index: 5, kind: input, shape index: {}]   ;;  %s1678_s6 = inlined_call_operand.vmem [shape: f32[16,16], index: 6, kind: input, shape index: {}]   ;;  %s1679_s7 = inlined_call_operand.vmem [shape: f32[2,64,64], index: 7, kind: input, shape index: {}]   ;;  %s1680_s8 = inlined_call_operand.vmem [shape: f32[2,1,64], index: 8, kind: input, shape index: {}]   ;;  %s1681_s9 = inlined_call_operand.vmem [shape: f32[16,16], index: 9, kind: input, shape index: {}]   ;;  %s1682_s10 = inlined_call_operand.vmem [shape: f32[64,32], index: 10, kind: input, shape index: {}]   ;;  %s1683_s11 = inlined_call_operand.vmem [shape: f32[1,32], index: 11, kind: input, shape index: {}]   ;;  %s1684_s12 = inlined_call_operand.vmem [shape: f32[32,32], index: 12, kind: input, shape index: {}]   ;;  %s1685_s13 = inlined_call_operand.vmem [shape: f32[1,32], index: 13, kind: input, shape index: {}]   ;;  %s1686_s14 = inlined_call_operand.vmem [shape: f32[8,192], index: 14, kind: output, shape index: {0}]   ;;  %s1687_s15 = inlined_call_operand.hbm [shape: f32[1,1], index: 15, kind: output, shape index: {1}]  }
   0x1   :  { %v52_v0 = vld [vmem:[%s1674_s2] sm:$0xff]  ;;  %v53_v1 = vld [vmem:[%s1674_s2 + $0x8] sm:$0xff]  ;;  %v54_v3 = vld [vmem:[%s1674_s2 + $0x10] sm:$0xf] }
   0x2   :  { %v1237_v2 = vpack.c.bf16 %v53_v1, %v52_v0  ;;  %v50_v4 = vld [vmem:[%s1672_s0] sm:$0xff]  ;;  %v151_v6 = vld [vmem:[%s1676_s4 + $0x8] sm:$0xff]  ;;  %v152_v7 = vld [vmem:[%s1676_s4 + $0x10] sm:$0xff] }
   0x3   :  { %v150_v5 = vld [vmem:[%s1676_s4] sm:$0xff]  ;;  %1111 = vmatprep.mubr.msk.f32.mxu0 %vm62_vm0, %v50_v4  ;;  %v153_v8 = vld [vmem:[%s1676_s4 + $0x18] sm:$0xff]  ;;  %v155_v12 = vld [vmem:[%s1676_s4 + $0x28] sm:$0xff] }
   0x4   :  { %1238 = vmatprep.subr.bf16.mxu0 %v1237_v2  ;;  %v1241_v9 = vpack.c.bf16 %v151_v6, %v150_v5  ;;  %v1245_v10 = vpack.c.bf16 %v153_v8, %v152_v7  ;;  %v154_v11 = vld [vmem:[%s1676_s4 + $0x20] sm:$0xff] }
   0x5   :  { %1240 = vmatpush3.bf16.msra.mxu0 %v1237_v2 }
   0x6   :  { %1109 = vmatprep.subr.msk.mxu0 %vm69_vm1, %v54_v3  ;;  %1242 = vmatprep.subr.bf16.mxu1 %v1241_v9 }
   0x7   :  { %21 = vsyncpa [#allocation3], 0  ;;  %v51_v13 = vld [vmem:[%s1672_s0 + $0x8] sm:$0xff]  ;;  %1244 = vmatpush3.bf16.msra.mxu1 %v1241_v9  ;;  %v1249_v14 = vpack.c.bf16 %v155_v12, %v154_v11  ;;  %v156_v15 = vld [vmem:[%s1676_s4 + $0x30] sm:$0xff]  ;;  %vm169_vm2 = vcmask 785408   ;;  %vm266_vm3 = vcmask 130048  }
   0x8   :  { %1246 = vmatprep.subr.bf16.mxu1 %v1245_v10  ;;  %v157_v16 = vld [vmem:[%s1676_s4 + $0x38] sm:$0xff]  ;;  %v158_v18 = vld [vmem:[%s1676_s4 + $0x40] sm:$0xff]  ;;  %v159_v19 = vld [vmem:[%s1676_s4 + $0x48] sm:$0xff]  ;;  %vm261_vm4 = vcmask 261120   ;;  %vm363_vm5 = vcmask 523264   ;;  %vm1368_vm6 = vmmov 0  }
   0x9   :  { %1110 = vmatpush3.msk.msra.mxu0 %vm69_vm1, %v54_v3  ;;  %v1253_v17 = vpack.c.bf16 %v157_v16, %v156_v15  ;;  %v1257_v20 = vpack.c.bf16 %v159_v19, %v158_v18  ;;  %v160_v21 = vld [vmem:[%s1676_s4 + $0x50] sm:$0xff]  ;;  %v161_v22 = vld [vmem:[%s1676_s4 + $0x58] sm:$0xff]  ;;  %v1002_v24 = vld [vmem:[%s1675_s3] ss:$0 sm:$0xff]  ;;  %s1366_s3 = smov 32   ;;  %vm975_vm7 = vcmask 0  }
   0xa   :  { %1112 = vmatmul.mubr.msk.f32.vlgmr.msra.gmra.mrb[0].mxu0 %vm62_vm0, %v51_v13  ;;  %v1261_v23 = vpack.c.bf16 %v161_v22, %v160_v21  ;;  %v1006_v31 = vld [vmem:[%s1677_s5] ss:$0 sm:$0xff]  ;;  %v349_v44 = vld [vmem:[%s1679_s7 + $0x8] sm:$0xff]  ;;  %v350_v49 = vld [vmem:[%s1679_s7 + $0x10] sm:$0xff] }
   0xb   :  { %1248 = vmatpush3.bf16.msra.mxu1 %v1245_v10  ;;  %v264_v35 = vld [vmem:[%s1678_s6] sm:$0xff]  ;;  %v351_v50 = vld [vmem:[%s1679_s7 + $0x18] sm:$0xff]  ;;  %v265_v51 = vld [vmem:[%s1678_s6 + $0x8] sm:$0xff] }
   0xc   :  { %1250 = vmatprep.subr.bf16.mxu1 %v1249_v14  ;;  %1145 = vmatprep.mubr.msk.f32.mxu0 %vm266_vm3, %v264_v35  ;;  %v348_v43 = vld [vmem:[%s1679_s7] sm:$0xff]  ;;  %v1273_v52 = vpack.c.bf16 %v351_v50, %v350_v49  ;;  %v353_v54 = vld [vmem:[%s1679_s7 + $0x28] sm:$0xff]  ;;  %v354_v56 = vld [vmem:[%s1679_s7 + $0x30] sm:$0xff] }
   0xd   :  { %v1269_v48 = vpack.c.bf16 %v349_v44, %v348_v43  ;;  %v352_v53 = vld [vmem:[%s1679_s7 + $0x20] sm:$0xff]  ;;  %v355_v57 = vld [vmem:[%s1679_s7 + $0x38] sm:$0xff]  ;;  %v1017_v62 = vld [vmem:[%s1679_s7 + $0x48] sm:$0xff] }
   0xe   :  { %v1277_v55 = vpack.c.bf16 %v353_v54, %v352_v53  ;;  %v1281_v58 = vpack.c.bf16 %v355_v57, %v354_v56  ;;  %v1016_v61 = vld [vmem:[%s1679_s7 + $0x40] sm:$0xff]  ;;  %v1018_v63 = vld [vmem:[%s1679_s7 + $0x50] sm:$0xff]  ;;  %v1019_v1 = vld [vmem:[%s1679_s7 + $0x58] sm:$0xff] }
   0xf   :  { %1252 = vmatpush3.bf16.msra.mxu1 %v1249_v14  ;;  %v1289_v0 = vpack.c.bf16 %v1017_v62, %v1016_v61  ;;  %v1293_v2 = vpack.c.bf16 %v1019_v1, %v1018_v63  ;;  %v1020_v3 = vld [vmem:[%s1679_s7 + $0x60] sm:$0xff]  ;;  %v1021_v4 = vld [vmem:[%s1679_s7 + $0x68] sm:$0xff]  ;;  %v1022_v6 = vld [vmem:[%s1679_s7 + $0x70] sm:$0xff] }
  0x10   :  { %1254 = vmatprep.subr.bf16.mxu1 %v1253_v17  ;;  %v1297_v5 = vpack.c.bf16 %v1021_v4, %v1020_v3  ;;  %v1023_v7 = vld [vmem:[%s1679_s7 + $0x78] sm:$0xff]  ;;  %v1011_v9 = vld [vmem:[%s1680_s8] ss:$0 sm:$0xff]  ;;  %v795_v44 = vld [vmem:[%s1682_s10 + $0x30] sm:$0xff] }
  0x11   :  { %v1301_v8 = vpack.c.bf16 %v1023_v7, %v1022_v6  ;;  %v623_v19 = vld [vmem:[%s1681_s9] sm:$0xff]  ;;  %v880_v50 = vld [vmem:[%s1684_s12 + $0x10] sm:$0xff] }
  0x12   :  { %v1034_v4 = vld [vmem:[%s1685_s13] ss:$0 sm:$0xff] }
  0x13   :  { %1256 = vmatpush3.bf16.msra.mxu1 %v1253_v17  ;;  %v962_v6 = vld [vmem:[%s1673_s1] sm:$0xff] }
  0x14   :  { %1258 = vmatprep.subr.bf16.mxu1 %v1257_v20 }
  0x17   :  { %1260 = vmatpush3.bf16.msra.mxu1 %v1257_v20  ;;  %v1025_v20 = vld [vmem:[%s1680_s8 + $0x1] ss:$0 sm:$0xff] }
  0x18   :  { %1262 = vmatprep.subr.bf16.mxu1 %v1261_v23 }
  0x1b   :  { %1264 = vmatpush3.bf16.msra.mxu1 %v1261_v23 }
  0xdd   :  { %v1113_v25 = vpop.f32.mrb[0].mxu0 }
  0xde   :  { %v145_v26 = vadd.f32 %v1113_v25, %v1002_v24  ;;  %v139_v27 = vpop.f32.mrb[1].mxu0 }
  0xdf   :  { %v140_v28 = vadd.f32 %v1002_v24, %v139_v27 }
  0xe0   :  { %v149_v30 = vmax.f32 %v145_v26, 0.0 }
  0xe1   :  { %v148_v29 = vmax.f32 %v140_v28, 0.0 }
  0xe3   :  { %1138 = vmatprep.mubr.msk.f32.mxu1 %vm169_vm2, %v148_v29  ;;  %v624_v29 = vld [vmem:[%s1681_s9 + $0x8] sm:$0xff] }
  0xe4   :  { %1139 = vmatmul.mubr.msk.f32.vlgmr.msra.gmra.mrb[0].mxu1 %vm169_vm2, %v149_v30  ;;  %v1367_v30 = vmov 0.0|0.0  }
  0xe5   :  { %1171 = vmatprep.mubr.msk.f32.mxu1 %vm266_vm3, %v264_v35  ;;  %v789_v35 = vld [vmem:[%s1682_s10] sm:$0xff] }
 0x1b7   :  { %v1140_v32 = vpop.f32.mrb[0].mxu1 }
 0x1b8   :  { %v248_v33 = vadd.f32 %v1140_v32, %v1006_v31  ;;  %v242_v34 = vpop.f32.mrb[1].mxu1 }
 0x1b9   :  { %v243_v36 = vadd.f32 %v1006_v31, %v242_v34  ;;  %v1369_v31 = vmov 0.0  }
 0x1ba   :  { %v252_v37 = vmax.f32 %v248_v33, 0.0 }
 0x1bb   :  { %v251_v38 = vmax.f32 %v243_v36, 0.0  ;;  %v790_v36 = vld [vmem:[%s1682_s10 + $0x8] sm:$0xff] }
 0x1bd   :  { %v1337_v39 = vpack.i.bf16 %v252_v37, %v251_v38 }
 0x1bf   :  { %1338 = vrot.lane.b32.xlu0 %v1337_v39, %s1366_s3  ;;  %v792_v39 = vld [vmem:[%s1682_s10 + $0x18] sm:$0xff]  ;;  %s1370_s3 = smov 64  }
 0x231   :  { %v1339_v40 = vpop.permute.xlu0 %1338 }
 0x232   :  { %v1341_v41 = vunpack.i.h.bf16 %v1339_v40  ;;  %v1340_v42 = vunpack.i.l.bf16 %v1339_v40 }
 0x234   :  { %v262_v45 = vsel %vm261_vm4, %v251_v38, %v1340_v42  ;;  %v263_v46 = vsel %vm261_vm4, %v252_v37, %v1341_v41  ;;  %v1314_v37 = vpack.c.bf16 %v790_v36, %v789_v35  ;;  %v791_v38 = vld [vmem:[%s1682_s10 + $0x10] sm:$0xff]  ;;  %v793_v41 = vld [vmem:[%s1682_s10 + $0x20] sm:$0xff]  ;;  %v794_v42 = vld [vmem:[%s1682_s10 + $0x28] sm:$0xff] }
 0x235   :  { %v1265_v47 = vpack.c.bf16 %v263_v46, %v262_v45  ;;  %v1317_v40 = vpack.c.bf16 %v792_v39, %v791_v38  ;;  %v1320_v43 = vpack.c.bf16 %v794_v42, %v793_v41  ;;  %v796_v45 = vld [vmem:[%s1682_s10 + $0x38] sm:$0xff] }
 0x236   :  { %v1323_v46 = vpack.c.bf16 %v796_v45, %v795_v44 }
 0x237   :  { %1266 = vmatprep.subr.bf16.mxu0 %v1265_v47 }
 0x238   :  { %1268 = vmatpush3.bf16.msra.mxu0 %v1265_v47  ;;  %v878_v47 = vld [vmem:[%s1684_s12] sm:$0xff] }
 0x239   :  { %1270 = vmatprep.subr.bf16.mxu0 %v1269_v48 }
 0x23b   :  { %1146 = vmatmul.mubr.msk.f32.vlgmr.msra.gmra.mrb[2].mxu0 %vm266_vm3, %v265_v51 }
 0x23c   :  { %1272 = vmatpush3.bf16.msra.mxu0 %v1269_v48  ;;  %v879_v48 = vld [vmem:[%s1684_s12 + $0x8] sm:$0xff] }
 0x23d   :  { %1274 = vmatprep.subr.bf16.mxu0 %v1273_v52  ;;  %v1326_v49 = vpack.c.bf16 %v879_v48, %v878_v47 }
 0x240   :  { %1276 = vmatpush3.bf16.msra.mxu0 %v1273_v52 }
 0x241   :  { %1278 = vmatprep.subr.bf16.mxu0 %v1277_v55 }
 0x244   :  { %1280 = vmatpush3.bf16.msra.mxu0 %v1277_v55 }
 0x245   :  { %1282 = vmatprep.subr.bf16.mxu0 %v1281_v58 }
 0x248   :  { %1284 = vmatpush3.bf16.msra.mxu0 %v1281_v58 }
 0x249   :  { %1290 = vmatprep.subr.bf16.mxu0 %v1289_v0 }
 0x30e   :  { %v1147_v59 = vpop.f32.mrb[2].mxu0 }
 0x30f   :  { %v339_v60 = vpop.f32.mrb[3].mxu0 }
 0x310   :  { %1164 = vmatprep.mubr.msk.f32.mxu0 %vm363_vm5, %v339_v60 }
 0x311   :  { %1165 = vmatmul.mubr.msk.f32.vlgmr.msra.gmra.mrb[4].mxu0 %vm363_vm5, %v1147_v59  ;;  %v1032_v59 = vld [vmem:[%s1683_s11] ss:$0 sm:$0xff] }
 0x312   :  { %1292 = vmatpush3.bf16.msra.mxu0 %v1289_v0 }
 0x313   :  { %1294 = vmatprep.subr.bf16.mxu0 %v1293_v2 }
 0x316   :  { %1296 = vmatpush3.bf16.msra.mxu0 %v1293_v2 }
 0x317   :  { %1298 = vmatprep.subr.bf16.mxu0 %v1297_v5 }
 0x31a   :  { %1300 = vmatpush3.bf16.msra.mxu0 %v1297_v5 }
 0x31b   :  { %1302 = vmatprep.subr.bf16.mxu0 %v1301_v8 }
 0x31e   :  { %1304 = vmatpush3.bf16.msra.mxu0 %v1301_v8 }
 0x31f   :  { %1325 = vmatprep.subr.bf16.mxu0 %v1367_v30 }
 0x3e4   :  { %v1166_v10 = vpop.f32.mrb[4].mxu0 }
 0x3e5   :  { %v442_v11 = vadd.f32 %v1166_v10, %v1011_v9  ;;  %v436_v12 = vpop.f32.mrb[5].mxu0 }
 0x3e6   :  { %v437_v13 = vadd.f32 %v1011_v9, %v436_v12 }
 0x3e7   :  { %v446_v14 = vmax.f32 %v442_v11, 0.0 }
 0x3e8   :  { %v445_v15 = vmax.f32 %v437_v13, 0.0 }
 0x3ea   :  { %v1285_v16 = vpack.c.bf16 %v446_v14, %v445_v15 }
 0x3ec   :  { %1286 = vmatprep.subr.bf16.mxu1 %v1285_v16 }
 0x3ed   :  { %1288 = vmatpush3.bf16.msra.mxu1 %v1285_v16 }
 0x3f0   :  { %1172 = vmatmul.mubr.msk.f32.vlgmr.msra.gmra.mrb[2].mxu1 %vm266_vm3, %v265_v51  ;;  %v881_v51 = vld [vmem:[%s1684_s12 + $0x18] sm:$0xff] }
 0x3f1   :  { %1197 = vmatprep.mubr.msk.f32.mxu1 %vm266_vm3, %v623_v19  ;;  %v1329_v52 = vpack.c.bf16 %v881_v51, %v880_v50 }
 0x4c3   :  { %v1173_v17 = vpop.f32.mrb[2].mxu1 }
 0x4c4   :  { %v513_v18 = vpop.f32.mrb[3].mxu1 }
 0x4c5   :  { %1190 = vmatprep.mubr.msk.f32.mxu0 %vm363_vm5, %v513_v18 }
 0x4c6   :  { %1191 = vmatmul.mubr.msk.f32.vlgmr.msra.gmra.mrb[6].mxu0 %vm363_vm5, %v1173_v17 }
 0x4c7   :  { %1234 = vmatprep.mubr.msk.f32.mxu0 %vm1368_vm6, %v1369_v31  ;;  %1327 = vmatpush3.bf16.msra.mxu0 %v1326_v49 }
 0x4c8   :  { %1328 = vmatprep.subr.bf16.mxu0 %v1367_v30 }
 0x4cb   :  { %1330 = vmatpush3.bf16.msra.mxu0 %v1329_v52 }
 0x599   :  { %v1192_v21 = vpop.f32.mrb[6].mxu0 }
 0x59a   :  { %v617_v22 = vadd.f32 %v1192_v21, %v1025_v20  ;;  %v611_v23 = vpop.f32.mrb[7].mxu0 }
 0x59b   :  { %v612_v24 = vadd.f32 %v1025_v20, %v611_v23 }
 0x59c   :  { %v621_v25 = vmax.f32 %v617_v22, 0.0 }
 0x59d   :  { %v620_v26 = vmax.f32 %v612_v24, 0.0 }
 0x59f   :  { %v1588_v27 = vsel %vm261_vm4, %v620_v26, %v621_v25 }
 0x5a0   :  { %983 = vst.msk [vmem:[%s1686_s14 + $0x8] sm:$0xff] %vm363_vm5, %v1588_v27  ;;  %v1305_v28 = vpack.c.bf16 %v1588_v27, %v1588_v27 }
 0x5a2   :  { %1306 = vmatprep.subr.bf16.mxu1 %v1305_v28 }
 0x5a3   :  { %1308 = vmatpush3.bf16.msra.mxu1 %v1305_v28 }
 0x5a6   :  { %1198 = vmatmul.mubr.msk.f32.vlgmr.msra.gmra.mrb[4].mxu1 %vm266_vm3, %v624_v29 }
 0x5a7   :  { %1204 = vmatprep.mubr.msk.f32.mxu1 %vm266_vm3, %v623_v19 }
 0x679   :  { %v1199_v32 = vpop.f32.mrb[4].mxu1 }
 0x67a   :  { %v697_v33 = vpop.f32.mrb[5].mxu1 }
 0x67b   :  { %v1309_v34 = vpack.c.bf16 %v1199_v32, %v697_v33 }
 0x67d   :  { %1310 = vmatprep.subr.bf16.mxu1 %v1309_v34 }
 0x67e   :  { %1312 = vmatpush3.bf16.msra.mxu1 %v1309_v34 }
 0x67f   :  { %1313 = vmatprep.subr.bf16.mxu1 %v1367_v30 }
 0x681   :  { %1205 = vmatmul.mubr.msk.f32.vlgmr.msra.gmra.mrb[6].mxu1 %vm266_vm3, %v624_v29 }
 0x682   :  { %1315 = vmatpush3.bf16.msra.mxu1 %v1314_v37  ;;  %1223 = vmatprep.mubr.msk.f32.mxu1 %vm1368_vm6, %v1369_v31 }
 0x683   :  { %1316 = vmatprep.subr.bf16.mxu1 %v1367_v30 }
 0x686   :  { %1318 = vmatpush3.bf16.msra.mxu1 %v1317_v40 }
 0x687   :  { %1319 = vmatprep.subr.bf16.mxu1 %v1367_v30 }
 0x68a   :  { %1321 = vmatpush3.bf16.msra.mxu1 %v1320_v43 }
 0x68b   :  { %1322 = vmatprep.subr.bf16.mxu1 %v1367_v30 }
 0x68e   :  { %1324 = vmatpush3.bf16.msra.mxu1 %v1323_v46 }
 0x691   :  { %1224 = vmatmul.mubr.msk.f32.vlgmr.msra.gmra.mrb[8].mxu1 %vm363_vm5, %v1588_v27 }
 0x754   :  { %v1206_v53 = vpop.f32.mrb[6].mxu1 }
 0x755   :  { %v784_v54 = vadd.f32 %v1206_v53, %v1199_v32  ;;  %v774_v55 = vpop.f32.mrb[7].mxu1 }
 0x756   :  { %v783_v56 = vadd.f32 %v774_v55, %v697_v33 }
 0x757   :  { %v786_v57 = vmul.f32 0.5, %v784_v54 }
 0x758   :  { %v785_v0 = vmul.f32 0.5, %v783_v56 }
 0x759   :  { %v788_v58 = vsub.f32 %v1588_v27, %v786_v57 }
 0x75a   :  { %v787_v1 = vsub.f32 %v1588_v27, %v785_v0 }
 0x75b   :  { %978 = vrot.lane.b32.xlu1 %v788_v58, %s1370_s3 }
 0x764   :  { %v873_v60 = vpop.f32.mrb[8].mxu1 }
 0x765   :  { %v874_v61 = vadd.f32 %v1032_v59, %v873_v60  ;;  %v1225_v62 = vpop.f32.mrb[9].mxu1 }
 0x767   :  { %v877_v63 = vmax.f32 %v874_v61, 0.0 }
 0x769   :  { %1235 = vmatmul.mubr.msk.f32.vlgmr.msra.gmra.mrb[8].mxu0 %vm261_vm4, %v877_v63 }
 0x7cd   :  { %v979_v2 = vpop.permute.xlu1 %978 }
 0x7ce   :  { %v981_v3 = vsel %vm363_vm5, %v787_v1, %v979_v2 }
 0x7cf   :  { %982 = vst [vmem:[%s1686_s14] sm:$0xff] %v981_v3  ;;  %s1371_s14 = smov [#allocation2]  }
 0x7d0   :  { %s992_s13 = sshll.u32 %s1371_s14, 4  ;;  %s993_s13 = int_to_ptr.vmem [resolvable:$true] %s992_s13 }
 0x7d1   :  { %s1342_s1 = scalar_lea.vmem %s993_s13, 16  ;;  %s1346_s28 = scalar_lea.vmem %s993_s13, 32 }
 0x7d2   :  { %p1343_p0 = scmp.ne.s32.totalorder %s993_s13, %s1342_s1  ;;  %p1347_p1 = scmp.lt.s32.totalorder %s993_s13, %s993_s13 }
 0x7d3   :  { %p1348_p2 = scmp.lt.s32.totalorder %s1346_s28, %s1342_s1 }
 0x7d5   :  { %p1349_p3 = por %p1348_p2, %p1347_p1 }
 0x7d7   :  { %p1350_p4 = pnand %p1349_p3, %p1343_p0 }
 0x83c   :  { %v958_v5 = vpop.f32.mrb[8].mxu0 }
 0x83d   :  { %v959_v7 = vadd.f32 %v1034_v4, %v958_v5  ;;  %v1236_v8 = vpop.f32.mrb[9].mxu0 }
 0x83f   :  { %v963_v9 = vsub.f32 %v962_v6, %v959_v7 }
 0x841   :  { %v964_v10 = vmul.f32 %v963_v9, %v963_v9 }
 0x843   :  { %v965_v11 = vsel %vm261_vm4, %v964_v10, 0.0 }
 0x844   :  { %966 = vadd.xlane.f32.xlu0 %v965_v11 }
 0x8d1   :  { %v967_v12 = vpop.xlane.xlu0 %966 }
 0x8d2   :  { %v968_v13 = vrot.slane %v967_v12, 4 }
 0x8d4   :  { %v969_v14 = vadd.f32 %v968_v13, %v967_v12 }
 0x8d6   :  { %v970_v15 = vrot.slane %v969_v14, 2 }
 0x8d8   :  { %v971_v16 = vadd.f32 %v970_v15, %v969_v14 }
 0x8da   :  { %v972_v17 = vrot.slane %v971_v16, 1 }
 0x8dc   :  { %v973_v18 = vadd.f32 %v972_v17, %v971_v16 }
 0x8de   :  { %v974_v19 = vmul.f32 0.00390625, %v973_v18 }
 0x8e0   :  { %976 = vst.msk [vmem:[#allocation2] sm:$0x1] %vm975_vm7, %v974_v19 }
 0x8e1   :  { %1353 = shalt.err (!%p1350_p4)
}
 0x8e2   :  { %s1354_s30 = scalar_lea.hbm %s1687_s15, 16 }
 0x8e3   :  { %p1355_p5 = scmp.ne.s32.totalorder %s1687_s15, %s1354_s30  ;;  %p1358_p6 = scmp.lt.u32.totalorder %s1354_s30, %s1687_s15 }
 0x8e5   :  { %p1360_p7 = pnand %p1358_p6, %p1355_p5 }
 0x8e7   :  { %1363 = shalt.err (!%p1360_p7)
}
 0x8e8   :  { %995 = dma.vmem_to_hbm [thread:$0]  %s993_s13, 16, %s1687_s15, [#allocation3]  }
 0x8e9   :  { %1364 = dma.done.wait [#allocation3], 16  }
 0x8ea   :  { %1365 = vsyncadd [#allocation3], 4294967280 }
 0x8eb   :  { %1001 = vsyncpa [#allocation3], 1 }

</bundles_post_ra>
